<compile_context>
chip_gen: v7x
topology: tpu7x:2x2x1
jax: 0.10.0
libtpu: 0.0.40
codegen_flags: <defaults>
</compile_context>

<pallas_src>
import functools

import jax
import jax.numpy as jnp
from jax.experimental import pallas as pl
from jax.experimental.pallas import tpu as pltpu

EPS = 1e-5


# ----------------------------- kernel bodies ------------------------------


def _withbias_ln_kernel(x_ref, w_ref, b_ref, o_ref):
    # x_ref/o_ref: (b_tile, C, T) with C on sublanes, T lane-dense.
    inv_c = jnp.float32(1.0 / x_ref.shape[1])
    xf = x_ref[...].astype(jnp.float32)
    mu = jnp.sum(xf, axis=1, keepdims=True) * inv_c            # (bt, 1, T)
    d = xf - mu                                                # reused by output
    var = jnp.sum(d * d, axis=1, keepdims=True) * inv_c        # two-pass, biased
    inv = jax.lax.rsqrt(var + EPS)
    w = w_ref[...].astype(jnp.float32)                         # (C, 1) -> bcast
    b = b_ref[...].astype(jnp.float32)
    o_ref[...] = (d * inv * w + b).astype(o_ref.dtype)


def _biasfree_ln_kernel(x_ref, w_ref, o_ref):
    inv_c = jnp.float32(1.0 / x_ref.shape[1])
    xf = x_ref[...].astype(jnp.float32)
    mu = jnp.sum(xf, axis=1, keepdims=True) * inv_c
    d = xf - mu
    var = jnp.sum(d * d, axis=1, keepdims=True) * inv_c
    inv = jax.lax.rsqrt(var + EPS)
    w = w_ref[...].astype(jnp.float32)
    # BiasFree does NOT subtract the mean in the numerator. Re-index x_ref so
    # the f32 copy need not stay live across the moment pass (bf16 inputs).
    o_ref[...] = (x_ref[...].astype(jnp.float32) * inv * w).astype(o_ref.dtype)


# --------------------------- tiling / budgeting ----------------------------


@functools.lru_cache(maxsize=None)
def _tpu_budget():
    """Returns (working_set_bytes, vmem_limit_bytes, min_grid_steps)."""
    kind = ""
    try:
        kind = jax.devices()[0].device_kind.lower()
    except Exception:
        pass
    vmem_cap = None
    try:
        vmem_cap = getattr(pltpu.get_tpu_info(), "vmem_capacity_bytes", None)
        vmem_cap = int(vmem_cap) if vmem_cap else None
    except Exception:
        vmem_cap = None

    is_v7 = ("v7" in kind) or ("7x" in kind) or (
        vmem_cap is not None and vmem_cap <= (64 << 20))
    is_v5 = ("v5" in kind)

    if is_v7:
        # 64 MiB physical VMEM per TC; 2 TensorCores share the parallel grid.
        working_set, vmem_limit, min_steps = (28 << 20), (48 << 20), 8
    elif is_v5:
        # ~0.82 TB/s HBM: ~2 MiB blocks already sit at roofline; stay modest.
        working_set, vmem_limit, min_steps = (12 << 20), (32 << 20), 4
    else:
        # v6e-class (128 MiB VMEM, ~1.4 TB/s HBM) and default fallback.
        working_set, vmem_limit, min_steps = (28 << 20), (64 << 20), 4

    if vmem_cap is not None:
        vmem_limit = min(vmem_limit, vmem_cap - (8 << 20))
    vmem_limit = max(vmem_limit, 16 << 20)
    return working_set, vmem_limit, min_steps


def _pick_tiles(b, c, hw, dtype, working_set_bytes, min_grid_steps):
    """Pick (b_tile, tile_hw) for blocks of shape (b_tile, C, tile_hw).

    Budget covers the whole working set: x + out blocks double-buffered in the
    native dtype plus ~3 block-sized f32 temporaries in the kernel body, with
    sublane padding of the (possibly tiny) channel axis accounted for.
    """
    itemsize = jnp.dtype(dtype).itemsize
    min_sublanes = max(8, 32 // itemsize)           # f32:8  bf16:16  int8:32
    c_pad = -(-c // min_sublanes) * min_sublanes
    col_bytes = c_pad * (4 * itemsize + 3 * 4)      # per lane-column per row
    cols_budget = int(max(128, working_set_bytes // col_bytes))

    # Lane tile: lane-dense multiple of 128 (or full extent). Prefer a size
    # that divides HW so every block/store stays unmasked and uniform.
    if hw <= cols_budget:
        tile_hw = hw
    else:
        tile_hw = (cols_budget // 128) * 128
        if hw % 128 == 0 and hw % tile_hw != 0:
            t = tile_hw
            floor_t = max(128, tile_hw // 2)
            while t > floor_t and hw % t != 0:
                t -= 128
            if hw % t == 0:
                tile_hw = t

    # Batch tile: fill the remaining column budget with whole batch rows
    # (kernel bodies reduce over axis=1, so a leading dim > 1 is free).
    b_budget = int(max(1, min(b, cols_budget // max(1, tile_hw))))
    b_tile = b_budget
    d = b_budget
    while d > 1 and b % d != 0:
        d -= 1
    if 2 * d >= b_budget:                           # divisor of B if cheap
        b_tile = d

    # Keep enough grid steps for pipelining / v7x megacore sharding.
    def n_steps(bt, th):
        return pl.cdiv(b, bt) * pl.cdiv(hw, th)

    while n_steps(b_tile, tile_hw) < min_grid_steps and b_tile > 1:
        b_tile = max(1, b_tile // 2)
    while (n_steps(b_tile, tile_hw) < min_grid_steps
           and tile_hw >= 1024 and tile_hw % 256 == 0):
        tile_hw //= 2
    return b_tile, tile_hw


# ------------------------------ pallas_call --------------------------------


def _run_ln_nchw(x3, weight, bias, layernorm_type):
    b, c, hw = x3.shape
    working_set, vmem_limit, min_steps = _tpu_budget()
    b_tile, tile_hw = _pick_tiles(b, c, hw, x3.dtype, working_set, min_steps)
    grid = (pl.cdiv(b, b_tile), pl.cdiv(hw, tile_hw))

    x_spec = pl.BlockSpec((b_tile, c, tile_hw), lambda bi, ti: (bi, 0, ti))
    p_spec = pl.BlockSpec((c, 1), lambda bi, ti: (0, 0))

    compiler_params = pltpu.CompilerParams(
        dimension_semantics=("parallel", "parallel"),
        vmem_limit_bytes=int(vmem_limit),
    )

    w2 = weight.reshape(c, 1).astype(jnp.float32)
    if layernorm_type == "BiasFree":
        kernel = _biasfree_ln_kernel
        inputs = (x3, w2)
        in_specs = [x_spec, p_spec]
    else:
        b2 = bias.reshape(c, 1).astype(jnp.float32)
        kernel = _withbias_ln_kernel
        inputs = (x3, w2, b2)
        in_specs = [x_spec, p_spec, p_spec]

    return pl.pallas_call(
        kernel,
        out_shape=jax.ShapeDtypeStruct((b, c, hw), x3.dtype),
        grid_spec=pltpu.PrefetchScalarGridSpec(
            num_scalar_prefetch=0,
            grid=grid,
            in_specs=in_specs,
            out_specs=x_spec,
        ),
        compiler_params=compiler_params,
    )(*inputs)


@functools.partial(jax.jit, static_argnames=("layernorm_type",))
def layer_norm(x_nchw, weight, bias, layernorm_type="WithBias"):
    """Pallas equivalent of LayerNorm(dim, LayerNorm_type).forward.

    x_nchw: (B, C, H, W). weight/bias: (C,). Returns (B, C, H, W).
    """
    b, c, h, w = x_nchw.shape
    x3 = x_nchw.reshape(b, c, h * w)          # layout-preserving view, no copy
    y3 = _run_ln_nchw(x3, weight, bias, layernorm_type)
    return y3.reshape(b, c, h, w)


# ------------------------------- reference ---------------------------------


def _reference(x_nchw, weight, bias, layernorm_type):
    b, c, h, w = x_nchw.shape
    x3d = jnp.transpose(x_nchw, (0, 2, 3, 1)).reshape(b, h * w, c)
    mu = jnp.mean(x3d, axis=-1, keepdims=True)
    var = jnp.mean((x3d - mu) ** 2, axis=-1, keepdims=True)
    if layernorm_type == "BiasFree":
        y = x3d / jnp.sqrt(var + EPS) * weight
    else:
        y = (x3d - mu) / jnp.sqrt(var + EPS) * weight + bias
    return jnp.transpose(y.reshape(b, h, w, c), (0, 3, 1, 2))


if __name__ == "__main__":
    key = jax.random.PRNGKey(0)
    kx, kw, kb = jax.random.split(key, 3)
    B, C, H, W = 2, 4, 16, 16   # dim = C = 4
    x = jax.random.normal(kx, (B, C, H, W), dtype=jnp.float32) * 2.0 + 0.5
    weight = 1.0 + 0.1 * jax.random.normal(kw, (C,), dtype=jnp.float32)
    bias = 0.1 * jax.random.normal(kb, (C,), dtype=jnp.float32)

    # f32 path
    for ln_type in ("WithBias", "BiasFree"):
        out = jax.block_until_ready(
            layer_norm(x, weight, bias, layernorm_type=ln_type))
        ref = _reference(x, weight, bias, ln_type)
        assert out.shape == (B, C, H, W)
        assert jnp.allclose(out, ref, atol=1e-5, rtol=1e-5), ln_type

    # bf16 path (f32 math inside the kernel, final downcast)
    xb = x.astype(jnp.bfloat16)
    wb = weight.astype(jnp.bfloat16)
    bb = bias.astype(jnp.bfloat16)
    for ln_type in ("WithBias", "BiasFree"):
        out = jax.block_until_ready(
            layer_norm(xb, wb, bb, layernorm_type=ln_type))
        ref = _reference(xb.astype(jnp.float32), wb.astype(jnp.float32),
                         bb.astype(jnp.float32), ln_type)
        assert out.dtype == jnp.bfloat16
        assert jnp.allclose(out.astype(jnp.float32), ref,
                            atol=5e-2, rtol=5e-2), ln_type

    print("KERNEL_OK")
</pallas_src>

<mosaic_0001>
module attributes {stable_mosaic.version = 11 : i64} {
  func.func @_withbias_ln_kernel(%arg0: i32, %arg1: i32, %arg2: memref<1x4x256xf32, #tpu.memory_space<vmem>>, %arg3: memref<4x1xf32, #tpu.memory_space<vmem>>, %arg4: memref<4x1xf32, #tpu.memory_space<vmem>>, %arg5: memref<1x4x256xf32, #tpu.memory_space<vmem>>) attributes {dimension_semantics = [#tpu.dimension_semantics<parallel>, #tpu.dimension_semantics<parallel>], iteration_bounds = array<i64: 2, 1>, scalar_prefetch = 0 : i64, scratch_operands = 0 : i64, tpu.core_type = #tpu.core_type<tc>, window_params = [{transform_indices = @transform_0, window_bounds = array<i64: 1, 4, 256>}, {pipeline_mode = #tpu.pipeline_mode<synchronous>, transform_indices = @transform_1, window_bounds = array<i64: 4, 1>}, {pipeline_mode = #tpu.pipeline_mode<synchronous>, transform_indices = @transform_2, window_bounds = array<i64: 4, 1>}, {transform_indices = @transform_3, window_bounds = array<i64: 1, 4, 256>}]} {
    %c0 = arith.constant 0 : index
    %c0_0 = arith.constant 0 : index
    %c0_1 = arith.constant 0 : index
    %0 = vector.load %arg2[%c0, %c0_0, %c0_1] : memref<1x4x256xf32, #tpu.memory_space<vmem>>, vector<1x4x256xf32>
    %cst = arith.constant dense<0.000000e+00> : vector<1x256xf32>
    %1 = vector.multi_reduction <add>, %0, %cst [1] : vector<1x4x256xf32> to vector<1x256xf32>
    %2 = vector.shape_cast %1 : vector<1x256xf32> to vector<1x1x256xf32>
    %cst_2 = arith.constant 2.500000e-01 : f32
    %3 = vector.broadcast %cst_2 : f32 to vector<1x1x256xf32>
    %4 = arith.mulf %2, %3 : vector<1x1x256xf32>
    %5 = vector.broadcast %4 : vector<1x1x256xf32> to vector<1x4x256xf32>
    %6 = arith.subf %0, %5 : vector<1x4x256xf32>
    %7 = arith.mulf %6, %6 : vector<1x4x256xf32>
    %cst_3 = arith.constant dense<0.000000e+00> : vector<1x256xf32>
    %8 = vector.multi_reduction <add>, %7, %cst_3 [1] : vector<1x4x256xf32> to vector<1x256xf32>
    %9 = vector.shape_cast %8 : vector<1x256xf32> to vector<1x1x256xf32>
    %cst_4 = arith.constant 2.500000e-01 : f32
    %10 = vector.broadcast %cst_4 : f32 to vector<1x1x256xf32>
    %11 = arith.mulf %9, %10 : vector<1x1x256xf32>
    %cst_5 = arith.constant 9.99999974E-6 : f32
    %12 = vector.broadcast %cst_5 : f32 to vector<1x1x256xf32>
    %13 = arith.addf %11, %12 : vector<1x1x256xf32>
    %14 = math.rsqrt %13 : vector<1x1x256xf32>
    %c0_6 = arith.constant 0 : index
    %c0_7 = arith.constant 0 : index
    %15 = vector.load %arg3[%c0_6, %c0_7] : memref<4x1xf32, #tpu.memory_space<vmem>>, vector<4x1xf32>
    %c0_8 = arith.constant 0 : index
    %c0_9 = arith.constant 0 : index
    %16 = vector.load %arg4[%c0_8, %c0_9] : memref<4x1xf32, #tpu.memory_space<vmem>>, vector<4x1xf32>
    %17 = vector.broadcast %14 : vector<1x1x256xf32> to vector<1x4x256xf32>
    %18 = arith.mulf %6, %17 : vector<1x4x256xf32>
    %19 = vector.shape_cast %15 : vector<4x1xf32> to vector<1x4x1xf32>
    %20 = vector.broadcast %19 : vector<1x4x1xf32> to vector<1x4x256xf32>
    %21 = arith.mulf %18, %20 : vector<1x4x256xf32>
    %22 = vector.shape_cast %16 : vector<4x1xf32> to vector<1x4x1xf32>
    %23 = vector.broadcast %22 : vector<1x4x1xf32> to vector<1x4x256xf32>
    %24 = arith.addf %21, %23 : vector<1x4x256xf32>
    %c0_10 = arith.constant 0 : index
    %c0_11 = arith.constant 0 : index
    %c0_12 = arith.constant 0 : index
    %25 = vector.load %arg5[%c0_10, %c0_11, %c0_12] : memref<1x4x256xf32, #tpu.memory_space<vmem>>, vector<1x4x256xf32>
    tpu.vector_store %arg5[%c0_10, %c0_11, %c0_12], %24 {strides = array<i32>} : memref<1x4x256xf32, #tpu.memory_space<vmem>>, vector<1x4x256xf32>,
    return
  }
  func.func @transform_0(%arg0: i32, %arg1: i32) -> (i32, i32, i32) {
    %c0_i32 = arith.constant 0 : i32
    %c0_i32_0 = arith.constant 0 : i32
    return %arg0, %c0_i32, %arg1 : i32, i32, i32
  }
  func.func @transform_1(%arg0: i32, %arg1: i32) -> (i32, i32) {
    %c0_i32 = arith.constant 0 : i32
    %c0_i32_0 = arith.constant 0 : i32
    %c0_i32_1 = arith.constant 0 : i32
    return %c0_i32, %c0_i32_0 : i32, i32
  }
  func.func @transform_2(%arg0: i32, %arg1: i32) -> (i32, i32) {
    %c0_i32 = arith.constant 0 : i32
    %c0_i32_0 = arith.constant 0 : i32
    %c0_i32_1 = arith.constant 0 : i32
    return %c0_i32, %c0_i32_0 : i32, i32
  }
  func.func @transform_3(%arg0: i32, %arg1: i32) -> (i32, i32, i32) {
    %c0_i32 = arith.constant 0 : i32
    %c0_i32_0 = arith.constant 0 : i32
    return %arg0, %c0_i32, %arg1 : i32, i32, i32
  }
}

</mosaic_0001>

<bundles_post_ra>
// kernel: layer_norm.1
= control target key start
LH: loop header
LB: loop body
LE: loop exit
PB: predicated region body
PF: predicated region fallthrough
CT: control target
= control target key end

     0   :  { %8 = vsyncpa [#allocation3], 0  ;;  %s999_s0 = inlined_call_operand.hbm [shape: f32[2,4,256], index: 0, kind: input, shape index: {}]   ;;  %s1000_s1 = inlined_call_operand.hbm [shape: f32[4,1], index: 1, kind: input, shape index: {}]   ;;  %s1001_s2 = inlined_call_operand.hbm [shape: f32[4,1], index: 2, kind: input, shape index: {}]   ;;  %s1002_s3 = inlined_call_operand.hbm [shape: f32[2,4,256], index: 3, kind: output, shape index: {}]  }
   0x1   :  { %10 = vsyncpa [#allocation3 + $0x1], 0 }
   0x2   :  { %11 = vsyncpa [#allocation6], 0 }
   0x3   :  { %12 = vsyncpa [#allocation4], 0 }
   0x4   :  { %14 = vsyncpa [#allocation4 + $0x1], 0  ;;  %s748_s12 = smov 0   ;;  %s750_s13 = smov 0  }
   0x5   :  { %s752_s14 = smov 0   ;;  %s754_s15 = smov 0  }
   0x6   :  { %s756_s16 = smov 0   ;;  %s758_s17 = smov 0  }
   0x7 LB: > { %s436_s18 = sadd.s32 4294967295, %s720_s17   ;;  %s437_s19 = sadd.s32 4294967294, %s720_s17   ;;  %s720_s17 = sphi %s758_s17, %s20_s17   ;;  %s716_s16 = sphi %s756_s16, %s1025_s16   ;;  %s712_s15 = sphi %s754_s15, %s1024_s15   ;;  %s708_s14 = sphi %s752_s14, %s1023_s14   ;;  %s704_s13 = sphi %s750_s13, %s1022_s13   ;;  %s700_s12 = sphi %s748_s12, %s1021_s12  }
   0x8   : > { %p54_p0 = scmp.ne.s32.totalorder %s704_s13, %s700_s12  ;;  %p782_p1 = scmp.eq.s32.totalorder %s436_s18, 0 }
   0x9   : > { %p786_p2 = scmp.eq.s32.totalorder %s436_s18, 1  ;;  %p128_p3 = scmp.eq.s32.totalorder %s437_s19, 1 }
   0xa   : > { %s1007_s20 = scalar_select %p782_p1, 1, 0 }
   0xb   : > { %s1008_s21 = scalar_select %p786_p2, 1, 0 }
   0xc   : > { %p792_p4 = por %p782_p1, %p54_p0  ;;  %p438_p5 = scmp.ge.s32.totalorder %s720_s17, 1 }
   0xd   : > { %p797_p6 = por %p128_p3, %p54_p0  ;;  %p135_p7 = scmp.lt.s32.totalorder %s720_s17, 3 }
   0xe   : > { %s1009_s22 = scalar_select %p792_p4, 1, 0 }
   0xf   : > { %s1010_s23 = scalar_select %p797_p6, 1, 0 }
  0x10   : > { %p802_p8 = pnand %p438_p5, %p135_p7  ;;  %s722_s25 = smov [#allocation5]  }
  0x11   : > { %s148_s26 = sshll.u32 %s722_s25, 4  ;;  %s723_s27 = smov [#allocation7]   ;;  %s149_s26 = int_to_ptr.vmem [resolvable:$true] %s148_s26 }
  0x12   : > { %s1011_s24 = scalar_select %p802_p8, 1, 0 }
  0x13   : > { %p469_p10 = pneg %p802_p8  ;;  %s159_s28 = sshll.u32 %s723_s27, 4  ;;  %s815_s28 = int_to_ptr.vmem [resolvable:$true] %s159_s28 }
  0x14   : > { %s548_s5 = scalar_lea.hbm %s1000_s1, 64 }
  0x15   : > { %p811_p11 = pnand %p469_p10, %p782_p1  ;;  %p549_p12 = scmp.ne.s32.totalorder %s1000_s1, %s548_s5 }
  0x16   : > { %p555_p5 = scmp.lt.u32.totalorder %s548_s5, %s1000_s1 }
  0x17   : > { %p550_p13 = pneg %p811_p11 }
  0x19   : > { %p551_p0 = pnand %p550_p13, %p549_p12 }
  0x1b   : > { %p552_p3 = pneg %p551_p0 }
  0x1d   : > { %p557_p7 = pnand %p555_p5, %p552_p3 }
  0x1f   : > { %560 = shalt.err (!%p557_p7)
}
  0x20   : > { %s561_s10 = scalar_lea.vmem %s149_s26, 64  ;;  %p569_p1 = scmp.lt.s32.totalorder %s149_s26, %s149_s26 }
  0x21   : > { %p562_p10 = scmp.ne.s32.totalorder %s149_s26, %s561_s10  ;;  %p570_p4 = scmp.lt.s32.totalorder %s561_s10, %s561_s10 }
  0x23   : > { %p564_p9 = pnand %p562_p10, %p550_p13  ;;  %p571_p8 = por %p570_p4, %p569_p1 }
  0x25   : > { %p565_p6 = pneg %p564_p9 }
  0x27   : > { %p572_p2 = pnand %p571_p8, %p565_p6 }
  0x29   : > { %575 = shalt.err (!%p572_p2)
}
  0x2a   : > { %472 = dma.hbm_to_vmem [thread:$0]  (!%p811_p11), %s1000_s1, 64, %s149_s26, [#allocation6]  }
  0x2b   : > { %s576_s27 = scalar_lea.hbm %s1001_s2, 64 }
  0x2c   : > { %p577_p9 = scmp.ne.s32.totalorder %s1001_s2, %s576_s27  ;;  %p583_p2 = scmp.lt.u32.totalorder %s576_s27, %s1001_s2 }
  0x2e   : > { %p579_p1 = pnand %p577_p9, %p550_p13 }
  0x30   : > { %p580_p4 = pneg %p579_p1 }
  0x32   : > { %p585_p6 = pnand %p583_p2, %p580_p4 }
  0x34   : > { %588 = shalt.err (!%p585_p6)
}
  0x35   : > { %s589_s26 = scalar_lea.vmem %s815_s28, 64  ;;  %p597_p3 = scmp.lt.s32.totalorder %s815_s28, %s815_s28 }
  0x36   : > { %p590_p8 = scmp.ne.s32.totalorder %s815_s28, %s589_s26  ;;  %p598_p5 = scmp.lt.s32.totalorder %s589_s26, %s589_s26 }
  0x38   : > { %p592_p12 = pnand %p590_p8, %p550_p13  ;;  %p599_p7 = por %p598_p5, %p597_p3 }
  0x3a   : > { %p593_p0 = pneg %p592_p12 }
  0x3c   : > { %p600_p10 = pnand %p599_p7, %p593_p0 }
  0x3e   : > { %603 = shalt.err (!%p600_p10)
}
  0x3f   : > { %475 = dma.hbm_to_vmem [thread:$0]  (!%p811_p11), %s1001_s2, 64, %s815_s28, [#allocation6]  }
  0x40   : > { %s32_s9 = sadd.s32 1, %s716_s16  ;;  %s41_s10 = sadd.s32 1, %s708_s14 }
  0x41   : > { %p34_p13 = scmp.ge.s32.totalorder %s32_s9, 2  ;;  %p48_p9 = scmp.ne.s32.totalorder %s708_s14, %s704_s13 }
  0x42   : > { %p49_p1 = scmp.eq.s32.totalorder %s720_s17, 0  ;;  %p486_p4 = scmp.lt.s32.totalorder %s720_s17, 2 }
  0x43   : > { %s1027_s9 = smov (%p34_p13, %s32_s9), 0  ;;  %p1013_p6 = scmp.ne.s32.totalorder %s1008_s21, 0 }
  0x44   : > { %p50_p2 = por %p49_p1, %p48_p9  ;;  %s36_s11 = ssub.s32 %s716_s16, %s1027_s9 }
  0x45   : > { %p874_p8 = por %p1013_p6, %p48_p9  ;;  %s170_s18 = sand.u32 1, %s708_s14  }
  0x46   : > { %p39_p12 = scmp.eq.s32.totalorder %s36_s11, 0  ;;  %s442_s28 = sshll.u32 %s170_s18, 3 }
  0x47   : > { %s455_s19 = sshll.u32 %s716_s16, 7  ;;  %s174_s21 = scalar_lea.vmem [#allocation2], %s442_s28 }
  0x48   : > { %s883_s25 = scalar_select %p39_p12, %s708_s14, %s41_s10  }
  0x49   : > { %s888_s4 = scalar_lea.hbm %s999_s0, %s455_s19  ;;  %s184_s5 = sshll.u32 %s174_s21, 4  ;;  %s896_s5 = int_to_ptr.vmem [resolvable:$true] %s184_s5 }
  0x4a   : > { %p892_p11 = pnand %p486_p4, %p50_p2  ;;  %s171_s26 = scalar_lea.sflag [#allocation3], %s170_s18 }
  0x4b   : > { %s604_s7 = scalar_lea.hbm %s888_s4, 128  ;;  %s609_s11 = scalar_lea.hbm %s999_s0, 256 }
  0x4c   : > { %p605_p0 = scmp.ne.s32.totalorder %s888_s4, %s604_s7  ;;  %p606_p3 = pneg %p892_p11 }
  0x4d   : > { %p610_p10 = scmp.lt.u32.totalorder %s888_s4, %s999_s0  ;;  %p611_p13 = scmp.lt.u32.totalorder %s609_s11, %s604_s7 }
  0x4e   : > { %p607_p5 = pnand %p606_p3, %p605_p0  ;;  %p613_p1 = scmp.lt.u32.totalorder %s604_s7, %s888_s4 }
  0x4f   : > { %p612_p9 = por %p611_p13, %p610_p10 }
  0x50   : > { %p608_p7 = pneg %p607_p5 }
  0x51   : > { %p614_p4 = por %p613_p1, %p612_p9 }
  0x53   : > { %p615_p2 = pnand %p614_p4, %p608_p7 }
  0x55   : > { %618 = shalt.err (!%p615_p2)
}
  0x56   : > { %s619_s18 = scalar_lea.vmem %s896_s5, 128  ;;  %s724_s27 = smov [#allocation2]  }
  0x57   : > { %p620_p6 = scmp.ne.s32.totalorder %s896_s5, %s619_s18  ;;  %s624_s30 = sshll.u32 %s724_s27, 4  ;;  %s625_s30 = int_to_ptr.vmem [resolvable:$false] %s624_s30 }
  0x58   : > { %s626_s21 = scalar_lea.vmem %s625_s30, 256  ;;  %p627_p5 = scmp.lt.s32.totalorder %s896_s5, %s625_s30 }
  0x59   : > { %p622_p12 = pnand %p620_p6, %p606_p3  ;;  %p628_p10 = scmp.lt.s32.totalorder %s626_s21, %s619_s18 }
  0x5b   : > { %p623_p0 = pneg %p622_p12  ;;  %p629_p13 = por %p628_p10, %p627_p5 }
  0x5d   : > { %p630_p9 = pnand %p629_p13, %p623_p0 }
  0x5f   : > { %633 = shalt.err (!%p630_p9)
}
  0x60   : > { %479 = dma.hbm_to_vmem [thread:$0]  (!%p892_p11), %s888_s4, 128, %s896_s5, %s171_s26  }
  0x61   : > { %p1016_p7 = scmp.ne.s32.totalorder %s1011_s24, 0 }
  0x62   : > { %s926_s7 = sand.u32 (!%p1016_p7), 1, %s704_s13   ;;  %p1017_p3 = scmp.ne.s32.totalorder (!%p1016_p7), %s1009_s22, 0 }
  0x63   : > { %193 = sbr.rel (%p1016_p7) target bundleno = 262 (0x106), region = 32  ;;  %s446_s8 = sshll.u32 (!%p1016_p7), %s926_s7, 3 }
  0x64   : > { %s196_s10 = scalar_lea.sflag (!%p1016_p7), [#allocation3], %s926_s7  ;;  %s199_s11 = scalar_lea.vmem (!%p1016_p7), [#allocation2], %s446_s8 }
  0x6a   : > { %687 = dma.done.wait (%p1017_p3), %s196_s10, 128  }
  0x6b   : > { %689 = vsyncadd (%p1017_p3), %s196_s10, 4294967168  ;;  %p1018_p11 = scmp.ne.s32.totalorder %s1007_s20, 0 }
  0x6d   : > { %691 = dma.done.wait (%p1018_p11), [#allocation6], 128  }
  0x6e   : > { %693 = vsyncadd (%p1018_p11), [#allocation6], 4294967168  ;;  %v725_v0 = vmov 0   ;;  %v282_v1 = vld [vmem:[#allocation5] sm:$0xf]  ;;  %v232_v3 = vld [vmem:[%s199_s11] sm:$0xff]  ;;  %v296_v45 = vlaneseq }
  0x6f   : > { %542 = vset.pattern.permute.xlu0 %v725_v0  ;;  %v283_v2 = vld [vmem:[#allocation7] sm:$0xf]  ;;  %v234_v4 = vcombine.high %v232_v3, %v232_v3  ;;  %vm236_vm0 = vcmask 1043456   ;;  %v726_v43 = vmov 839922192   ;;  %s456_s20 = sshll.u32 %s712_s15, 7 }
  0x70   : > { %291 = vperm.xlu0 %542, %v282_v1   ;;  %v237_v5 = vsel %vm236_vm0, %v232_v3, 0.0  ;;  %v294_v44 = vunpack.c.l.s4 %v726_v43  ;;  %v297_v48 = vshrl.u32 %v296_v45, 7  ;;  %s229_s22 = scalar_lea.vmem [#allocation8], %s446_s8  ;;  %s950_s6 = scalar_lea.hbm %s1002_s3, %s456_s20 }
  0x71   : > { %v244_v6 = vsel %vm236_vm0, %v234_v4, 0.0  ;;  %v238_v7 = vrot.slane %v237_v5, 4  ;;  %s333_s24 = sshll.u32 %s229_s22, 4  ;;  %s317_s26 = scalar_lea.sflag [#allocation4], %s926_s7  ;;  %s952_s24 = int_to_ptr.vmem [resolvable:$true] %s333_s24 }
  0x72   : > { %v245_v8 = vrot.slane %v244_v6, 4  ;;  %v295_v47 = vunpack.c.0.s8 %v294_v44  ;;  %s634_s28 = scalar_lea.vmem %s952_s24, 128  ;;  %s727_s15 = smov [#allocation8]  }
  0x73   : > { %v239_v9 = vadd.f32 %v238_v7, %v237_v5  ;;  %p635_p1 = scmp.ne.s32.totalorder %s952_s24, %s634_s28  ;;  %s638_s19 = sshll.u32 %s727_s15, 4  ;;  %s639_s19 = int_to_ptr.vmem [resolvable:$false] %s638_s19 }
  0x74   : > { %304 = vperm.xlu0 %542, %v283_v2   ;;  %v246_v10 = vadd.f32 %v245_v8, %v244_v6  ;;  %v298_v50 = vsub.s32 %v295_v47, %v297_v48  ;;  %s640_s18 = scalar_lea.vmem %s639_s19, 256  ;;  %p641_p6 = scmp.lt.s32.totalorder %s952_s24, %s639_s19 }
  0x75   : > { %v240_v11 = vrot.slane %v239_v9, 2  ;;  %p636_p4 = pnand %p635_p1, %p874_p8  ;;  %p642_p12 = scmp.lt.s32.totalorder %s640_s18, %s634_s28 }
  0x76   : > { %v247_v12 = vrot.slane %v246_v10, 2 }
  0x77   : > { %v241_v13 = vadd.f32 %v240_v11, %v239_v9  ;;  %p637_p2 = pneg %p636_p4  ;;  %p643_p0 = por %p642_p12, %p641_p6 }
  0x78   : > { %v248_v14 = vadd.f32 %v247_v12, %v246_v10 }
  0x79   : > { %v242_v15 = vrot.slane %v241_v13, 1  ;;  %p644_p5 = pnand %p643_p0, %p637_p2 }
  0x7a   : > { %v249_v16 = vrot.slane %v248_v14, 1 }
  0x7b   : > { %v243_v17 = vadd.f32 %v242_v15, %v241_v13 }
  0x7c   : > { %v250_v18 = vadd.f32 %v249_v16, %v248_v14 }
  0x7d   : > { %v251_v19 = vmul.f32 0.25, %v243_v17 }
  0x7e   : > { %v252_v20 = vmul.f32 0.25, %v250_v18 }
  0x80   : > { %v255_v21 = vcombine.low %v251_v19, %v252_v20 }
  0x82   : > { %v257_v22 = vsub.f32 %v232_v3, %v255_v21 }
  0x84   : > { %v258_v23 = vmul.f32 %v257_v22, %v257_v22 }
  0x86   : > { %v260_v24 = vcombine.high %v258_v23, %v258_v23  ;;  %v262_v25 = vsel %vm236_vm0, %v258_v23, 0.0 }
  0x87   : > { %v263_v27 = vrot.slane %v262_v25, 4 }
  0x88   : > { %v269_v26 = vsel %vm236_vm0, %v260_v24, 0.0 }
  0x89   : > { %v270_v28 = vrot.slane %v269_v26, 4  ;;  %v264_v29 = vadd.f32 %v263_v27, %v262_v25 }
  0x8b   : > { %v271_v30 = vadd.f32 %v270_v28, %v269_v26  ;;  %v265_v31 = vrot.slane %v264_v29, 2 }
  0x8d   : > { %v272_v32 = vrot.slane %v271_v30, 2  ;;  %v266_v33 = vadd.f32 %v265_v31, %v264_v29 }
  0x8f   : > { %v273_v34 = vadd.f32 %v272_v32, %v271_v30  ;;  %v267_v35 = vrot.slane %v266_v33, 1 }
  0x91   : > { %v274_v36 = vrot.slane %v273_v34, 1  ;;  %v268_v37 = vadd.f32 %v267_v35, %v266_v33 }
  0x93   : > { %v275_v38 = vadd.f32 %v274_v36, %v273_v34  ;;  %v276_v39 = vmul.f32 0.25, %v268_v37 }
  0x95   : > { %v277_v40 = vmul.f32 0.25, %v275_v38  ;;  %v278_v41 = vadd.f32 1e-05, %v276_v39 }
  0x97   : > { %v279_v42 = vadd.f32 1e-05, %v277_v40  ;;  %544 = vrsqrt.f32 %v278_v41 }
  0x99   : > { %546 = vrsqrt.f32 %v279_v42 }
  0xa1   : > { %v545_v46 = vpop.eup %544 }
  0xa3   : > { %v547_v49 = vpop.eup %546 }
  0xa4   : > { %v286_v51 = vcombine.low %v545_v46, %v547_v49 }
  0xa6   : > { %v288_v53 = vmul.f32 %v286_v51, %v257_v22 }
  0xef   : > { %v292_v52 = vpop.permute.xlu0 %291 }
  0xf0   : > { %v299_v54 = vrot.slane %v292_v52, %v298_v50 }
  0xf2   : > { %v301_v56 = vmul.f32 %v299_v54, %v288_v53 }
  0xf3   : > { %v305_v55 = vpop.permute.xlu0 %304 }
  0xf4   : > { %v312_v57 = vrot.slane %v305_v55, %v298_v50 }
  0xf6   : > { %v314_v58 = vadd.f32 %v312_v57, %v301_v56 }
  0xf8   : > { %315 = vst [vmem:[%s229_s22] sm:$0xff] %v314_v58 }
  0xf9   : > { %647 = shalt.err (!%p644_p5)
}
  0xfa   : > { %s648_s27 = scalar_lea.hbm %s950_s6, 128  ;;  %s652_s7 = scalar_lea.hbm %s1002_s3, 256 }
  0xfb   : > { %p649_p10 = scmp.ne.s32.totalorder %s950_s6, %s648_s27  ;;  %p653_p7 = scmp.lt.u32.totalorder %s950_s6, %s1002_s3 }
  0xfc   : > { %p654_p3 = scmp.lt.u32.totalorder %s652_s7, %s648_s27  ;;  %p656_p1 = scmp.lt.u32.totalorder %s648_s27, %s950_s6 }
  0xfd   : > { %p650_p13 = pnand %p649_p10, %p874_p8 }
  0xfe   : > { %p655_p11 = por %p654_p3, %p653_p7 }
  0xff   : > { %p651_p9 = pneg %p650_p13 }
 0x100   : > { %p657_p4 = por %p656_p1, %p655_p11 }
 0x102   : > { %p658_p2 = pnand %p657_p4, %p651_p9 }
 0x104   : > { %661 = shalt.err (!%p658_p2)
}
 0x105   : > { %467 = dma.vmem_to_hbm [thread:$0]  (%p874_p8), %s952_s24, 128, %s950_s6, %s317_s26  }
 0x106 PF: > { %s345_s11 = sand.u32 1, %s700_s12   ;;  %p1019_p6 = scmp.ne.s32.totalorder %s1010_s23, 0 }
 0x107   : > { %p1020_p12 = scmp.ge.s32.totalorder %s720_s17, 2  ;;  %s346_s20 = scalar_lea.sflag [#allocation4], %s345_s11 }
 0x109   : > { %p481_p0 = pnand %p1020_p12, %p1019_p6 }
 0x10b   : > { %695 = dma.done.wait (!%p481_p0), %s346_s20, 128  }
 0x10c   : > { %697 = vsyncadd (!%p481_p0), %s346_s20, 4294967168  ;;  %s20_s17 = sadd.s32 1, %s720_s17   ;;  %s1021_s12 = smov %s704_s13 }
 0x10d   : > { %p17_p5 = scmp.ge.s32.totalorder %s20_s17, 4   ;;  %s1022_s13 = smov %s708_s14 }
 0x10e   : > { %s1023_s14 = smov %s883_s25  ;;  %s1024_s15 = smov %s716_s16 }
 0x10f   : > { %s1025_s16 = smov %s1027_s9  ;;  %19 = sbr.rel (!%p17_p5) target bundleno = 7 (0x7), region = 85 }
 0x116   :  { %351 = vsyncpa [#allocation3], 1 }
 0x117   :  { %353 = vsyncpa [#allocation3 + $0x1], 1 }
 0x118   :  { %354 = vsyncpa [#allocation6], 1 }
 0x119   :  { %355 = vsyncpa [#allocation4], 1 }
 0x11a   :  { %357 = vsyncpa [#allocation4 + $0x1], 1 }

</bundles_post_ra>
